<compile_context>
chip_gen: v6e
topology: v6e:2x2x1
jax: 0.10.0
libtpu: 0.0.40
codegen_flags: <defaults>
</compile_context>

<pallas_src>
import jax
import jax.numpy as jnp
from jax.experimental import pallas as pl
from jax.experimental.pallas import tpu as pltpu


NEG_SLOPE = 0.01  # PyTorch LeakyReLU default negative_slope


def _leaky_relu(x):
    # max(x, a*x) == LeakyReLU for 0 < a < 1 -> single mul+max (no cmp+select).
    return jnp.maximum(x, NEG_SLOPE * x)


def conv1x1_mlp_kernel(x_ref, w1_ref, b1_ref, w2_ref, b2_ref, w3_ref, b3_ref,
                       o_ref):
    # x_ref: (C_in, TS) tile -- channels on sublanes, pixels on lanes.
    x = x_ref[...].astype(jnp.float32)

    h = jnp.dot(w1_ref[...], x, preferred_element_type=jnp.float32) + b1_ref[...]
    h = _leaky_relu(h)

    h = jnp.dot(w2_ref[...], h, preferred_element_type=jnp.float32) + b2_ref[...]
    h = _leaky_relu(h)

    y = jnp.dot(w3_ref[...], h, preferred_element_type=jnp.float32) + b3_ref[...]
    o_ref[...] = y.astype(o_ref.dtype)


def conv2d1x1_forward(x_nchw, params, *, ts=2048):
    """x_nchw: (N, C_in, H, W).

    params: w1 (hidden, c_in), b1 (hidden, 1), w2 (hidden, hidden),
            b2 (hidden, 1), w3 (c_out, hidden), b3 (c_out, 1)
    (i.e. PyTorch conv weights (C_out, C_in, 1, 1) with the 1x1 dims squeezed).
    """
    n, c_in, h, w = x_nchw.shape
    w1, b1 = params["w1"], params["b1"]
    w2, b2 = params["w2"], params["b2"]
    w3, b3 = params["w3"], params["b3"]
    hidden = w1.shape[0]
    c_out = w3.shape[0]

    s = h * w
    # Large lane-dense spatial tile (multiple of 128), capped at what the
    # input actually needs so small images don't pay for padding.
    ts = min(ts, ((s + 127) // 128) * 128)
    s_pad = ((s + ts - 1) // ts) * ts

    # NCHW -> (N, C_in, S); no transpose, just a view-style reshape.
    x_r = x_nchw.reshape(n, c_in, s)
    if s_pad != s:
        x_r = jnp.pad(x_r, ((0, 0), (0, 0), (0, s_pad - s)))

    grid = (n, s_pad // ts)

    # Advisory cost hint so XLA can overlap this mem-bound call with neighbors.
    flops = 2 * n * s_pad * (c_in * hidden + hidden * hidden + hidden * c_out)
    bytes_accessed = (
        x_r.size * x_r.dtype.itemsize
        + n * c_out * s_pad * x_nchw.dtype.itemsize
        + sum(int(p.size) * p.dtype.itemsize for p in (w1, b1, w2, b2, w3, b3))
    )

    out_r = pl.pallas_call(
        conv1x1_mlp_kernel,
        out_shape=jax.ShapeDtypeStruct((n, c_out, s_pad), x_nchw.dtype),
        grid_spec=pltpu.PrefetchScalarGridSpec(
            num_scalar_prefetch=0,
            grid=grid,
            in_specs=[
                # Activations: batch squeezed, full channels, lane-dense tile.
                pl.BlockSpec((None, c_in, ts), lambda ni, si: (ni, 0, si)),
                # Weights/biases: constant index_map -> DMA'd once, then held
                # resident (block index never changes between steps).
                pl.BlockSpec((hidden, c_in), lambda ni, si: (0, 0)),
                pl.BlockSpec((hidden, 1), lambda ni, si: (0, 0)),
                pl.BlockSpec((hidden, hidden), lambda ni, si: (0, 0)),
                pl.BlockSpec((hidden, 1), lambda ni, si: (0, 0)),
                pl.BlockSpec((c_out, hidden), lambda ni, si: (0, 0)),
                pl.BlockSpec((c_out, 1), lambda ni, si: (0, 0)),
            ],
            out_specs=pl.BlockSpec((None, c_out, ts), lambda ni, si: (ni, 0, si)),
        ),
        compiler_params=pltpu.CompilerParams(
            dimension_semantics=("parallel", "parallel")),
        cost_estimate=pl.CostEstimate(
            flops=flops, transcendentals=0, bytes_accessed=bytes_accessed),
    )(x_r, w1, b1, w2, b2, w3, b3)

    out_r = out_r[:, :, :s]
    return out_r.reshape(n, c_out, h, w)


def init_params(key, in_f, hidden_dim, out_f, dtype=jnp.float32):
    """Deterministic init mimicking Conv2d default (uniform +/- 1/sqrt(fan_in))."""
    ks = jax.random.split(key, 6)

    def uconv(k, fan_in, shape):
        bound = 1.0 / jnp.sqrt(fan_in)
        return jax.random.uniform(k, shape, dtype, minval=-bound, maxval=bound)

    return {
        "w1": uconv(ks[0], in_f, (hidden_dim, in_f)),
        "b1": uconv(ks[1], in_f, (hidden_dim, 1)),
        "w2": uconv(ks[2], hidden_dim, (hidden_dim, hidden_dim)),
        "b2": uconv(ks[3], hidden_dim, (hidden_dim, 1)),
        "w3": uconv(ks[4], hidden_dim, (out_f, hidden_dim)),
        "b3": uconv(ks[5], hidden_dim, (out_f, 1)),
    }


def reference_forward(x_nchw, params):
    """Plain-JAX reference of the PyTorch module."""
    n, c, h, w = x_nchw.shape
    x = x_nchw.reshape(n, c, h * w).astype(jnp.float32)

    def lin(v, wt, b):
        return (jnp.einsum("oc,ncs->nos", wt.astype(jnp.float32), v)
                + b[None].astype(jnp.float32))

    y = _leaky_relu(lin(x, params["w1"], params["b1"]))
    y = _leaky_relu(lin(y, params["w2"], params["b2"]))
    y = lin(y, params["w3"], params["b3"])
    return y.reshape(n, -1, h, w).astype(x_nchw.dtype)


if __name__ == "__main__":
    key = jax.random.PRNGKey(0)
    k_x, k_p = jax.random.split(key)

    # Small shapes consistent with the module: N=2, in_f=4, H=W=16,
    # hidden_dim=32, out_f=8.
    N, IN_F, H, W = 2, 4, 16, 16
    HIDDEN, OUT_F = 32, 8

    x = jax.random.normal(k_x, (N, IN_F, H, W), dtype=jnp.float32)
    params = init_params(k_p, IN_F, HIDDEN, OUT_F)

    out = conv2d1x1_forward(x, params)
    out = jax.block_until_ready(out)

    ref = reference_forward(x, params)
    assert out.shape == (N, OUT_F, H, W), out.shape
    assert jnp.allclose(out, ref, atol=1e-4, rtol=1e-4), "mismatch vs reference"

    print("KERNEL_OK")
</pallas_src>

<mosaic_0001>
module attributes {stable_mosaic.version = 11 : i64} {
  func.func @conv1x1_mlp_kernel(%arg0: i32, %arg1: i32, %arg2: memref<1x4x256xf32, #tpu.memory_space<vmem>>, %arg3: memref<32x4xf32, #tpu.memory_space<vmem>>, %arg4: memref<32x1xf32, #tpu.memory_space<vmem>>, %arg5: memref<32x32xf32, #tpu.memory_space<vmem>>, %arg6: memref<32x1xf32, #tpu.memory_space<vmem>>, %arg7: memref<8x32xf32, #tpu.memory_space<vmem>>, %arg8: memref<8x1xf32, #tpu.memory_space<vmem>>, %arg9: memref<1x8x256xf32, #tpu.memory_space<vmem>>) attributes {dimension_semantics = [#tpu.dimension_semantics<parallel>, #tpu.dimension_semantics<parallel>], iteration_bounds = array<i64: 2, 1>, scalar_prefetch = 0 : i64, scratch_operands = 0 : i64, tpu.core_type = #tpu.core_type<tc>, window_params = [{transform_indices = @transform_0, window_bounds = array<i64: 1, 4, 256>}, {pipeline_mode = #tpu.pipeline_mode<synchronous>, transform_indices = @transform_1, window_bounds = array<i64: 32, 4>}, {pipeline_mode = #tpu.pipeline_mode<synchronous>, transform_indices = @transform_2, window_bounds = array<i64: 32, 1>}, {pipeline_mode = #tpu.pipeline_mode<synchronous>, transform_indices = @transform_3, window_bounds = array<i64: 32, 32>}, {pipeline_mode = #tpu.pipeline_mode<synchronous>, transform_indices = @transform_4, window_bounds = array<i64: 32, 1>}, {pipeline_mode = #tpu.pipeline_mode<synchronous>, transform_indices = @transform_5, window_bounds = array<i64: 8, 32>}, {pipeline_mode = #tpu.pipeline_mode<synchronous>, transform_indices = @transform_6, window_bounds = array<i64: 8, 1>}, {transform_indices = @transform_7, window_bounds = array<i64: 1, 8, 256>}]} {
    %c0 = arith.constant 0 : index
    %c0_0 = arith.constant 0 : index
    %c0_1 = arith.constant 0 : index
    %0 = vector.load %arg2[%c0, %c0_0, %c0_1] : memref<1x4x256xf32, #tpu.memory_space<vmem>>, vector<1x4x256xf32>
    %1 = vector.shape_cast %0 : vector<1x4x256xf32> to vector<4x256xf32>
    %c0_2 = arith.constant 0 : index
    %c0_3 = arith.constant 0 : index
    %2 = vector.load %arg3[%c0_2, %c0_3] : memref<32x4xf32, #tpu.memory_space<vmem>>, vector<32x4xf32>
    %cst = arith.constant dense<0.000000e+00> : vector<32x256xf32>
    %3 = tpu.matmul %2, %1, %cst {dimension_numbers = #tpu.dot_dimension_numbers<[1], [0], [0], [1], [0, 0, 1, 1], [], []>} : vector<32x4xf32>, vector<4x256xf32>, vector<32x256xf32> -> vector<32x256xf32>
    %c0_4 = arith.constant 0 : index
    %c0_5 = arith.constant 0 : index
    %4 = vector.load %arg4[%c0_4, %c0_5] : memref<32x1xf32, #tpu.memory_space<vmem>>, vector<32x1xf32>
    %5 = vector.broadcast %4 : vector<32x1xf32> to vector<32x256xf32>
    %6 = arith.addf %3, %5 : vector<32x256xf32>
    %cst_6 = arith.constant 0.00999999977 : f32
    %7 = vector.broadcast %cst_6 : f32 to vector<32x256xf32>
    %8 = arith.mulf %7, %6 : vector<32x256xf32>
    %9 = arith.maximumf %6, %8 : vector<32x256xf32>
    %c0_7 = arith.constant 0 : index
    %c0_8 = arith.constant 0 : index
    %10 = vector.load %arg5[%c0_7, %c0_8] : memref<32x32xf32, #tpu.memory_space<vmem>>, vector<32x32xf32>
    %cst_9 = arith.constant dense<0.000000e+00> : vector<32x256xf32>
    %11 = tpu.matmul %10, %9, %cst_9 {dimension_numbers = #tpu.dot_dimension_numbers<[1], [0], [0], [1], [0, 0, 1, 1], [], []>} : vector<32x32xf32>, vector<32x256xf32>, vector<32x256xf32> -> vector<32x256xf32>
    %c0_10 = arith.constant 0 : index
    %c0_11 = arith.constant 0 : index
    %12 = vector.load %arg6[%c0_10, %c0_11] : memref<32x1xf32, #tpu.memory_space<vmem>>, vector<32x1xf32>
    %13 = vector.broadcast %12 : vector<32x1xf32> to vector<32x256xf32>
    %14 = arith.addf %11, %13 : vector<32x256xf32>
    %cst_12 = arith.constant 0.00999999977 : f32
    %15 = vector.broadcast %cst_12 : f32 to vector<32x256xf32>
    %16 = arith.mulf %15, %14 : vector<32x256xf32>
    %17 = arith.maximumf %14, %16 : vector<32x256xf32>
    %c0_13 = arith.constant 0 : index
    %c0_14 = arith.constant 0 : index
    %18 = vector.load %arg7[%c0_13, %c0_14] : memref<8x32xf32, #tpu.memory_space<vmem>>, vector<8x32xf32>
    %cst_15 = arith.constant dense<0.000000e+00> : vector<8x256xf32>
    %19 = tpu.matmul %18, %17, %cst_15 {dimension_numbers = #tpu.dot_dimension_numbers<[1], [0], [0], [1], [0, 0, 1, 1], [], []>} : vector<8x32xf32>, vector<32x256xf32>, vector<8x256xf32> -> vector<8x256xf32>
    %c0_16 = arith.constant 0 : index
    %c0_17 = arith.constant 0 : index
    %20 = vector.load %arg8[%c0_16, %c0_17] : memref<8x1xf32, #tpu.memory_space<vmem>>, vector<8x1xf32>
    %21 = vector.broadcast %20 : vector<8x1xf32> to vector<8x256xf32>
    %22 = arith.addf %19, %21 : vector<8x256xf32>
    %c0_18 = arith.constant 0 : index
    %c0_19 = arith.constant 0 : index
    %c0_20 = arith.constant 0 : index
    %23 = vector.load %arg9[%c0_18, %c0_19, %c0_20] : memref<1x8x256xf32, #tpu.memory_space<vmem>>, vector<1x8x256xf32>
    %24 = vector.shape_cast %23 : vector<1x8x256xf32> to vector<8x256xf32>
    %25 = vector.shape_cast %22 : vector<8x256xf32> to vector<1x8x256xf32>
    tpu.vector_store %arg9[%c0_18, %c0_19, %c0_20], %25 {strides = array<i32>} : memref<1x8x256xf32, #tpu.memory_space<vmem>>, vector<1x8x256xf32>,
    return
  }
  func.func @transform_0(%arg0: i32, %arg1: i32) -> (i32, i32, i32) {
    %c0_i32 = arith.constant 0 : i32
    %c0_i32_0 = arith.constant 0 : i32
    return %arg0, %c0_i32, %arg1 : i32, i32, i32
  }
  func.func @transform_1(%arg0: i32, %arg1: i32) -> (i32, i32) {
    %c0_i32 = arith.constant 0 : i32
    %c0_i32_0 = arith.constant 0 : i32
    %c0_i32_1 = arith.constant 0 : i32
    return %c0_i32, %c0_i32_0 : i32, i32
  }
  func.func @transform_2(%arg0: i32, %arg1: i32) -> (i32, i32) {
    %c0_i32 = arith.constant 0 : i32
    %c0_i32_0 = arith.constant 0 : i32
    %c0_i32_1 = arith.constant 0 : i32
    return %c0_i32, %c0_i32_0 : i32, i32
  }
  func.func @transform_3(%arg0: i32, %arg1: i32) -> (i32, i32) {
    %c0_i32 = arith.constant 0 : i32
    %c0_i32_0 = arith.constant 0 : i32
    %c0_i32_1 = arith.constant 0 : i32
    return %c0_i32, %c0_i32_0 : i32, i32
  }
  func.func @transform_4(%arg0: i32, %arg1: i32) -> (i32, i32) {
    %c0_i32 = arith.constant 0 : i32
    %c0_i32_0 = arith.constant 0 : i32
    %c0_i32_1 = arith.constant 0 : i32
    return %c0_i32, %c0_i32_0 : i32, i32
  }
  func.func @transform_5(%arg0: i32, %arg1: i32) -> (i32, i32) {
    %c0_i32 = arith.constant 0 : i32
    %c0_i32_0 = arith.constant 0 : i32
    %c0_i32_1 = arith.constant 0 : i32
    return %c0_i32, %c0_i32_0 : i32, i32
  }
  func.func @transform_6(%arg0: i32, %arg1: i32) -> (i32, i32) {
    %c0_i32 = arith.constant 0 : i32
    %c0_i32_0 = arith.constant 0 : i32
    %c0_i32_1 = arith.constant 0 : i32
    return %c0_i32, %c0_i32_0 : i32, i32
  }
  func.func @transform_7(%arg0: i32, %arg1: i32) -> (i32, i32, i32) {
    %c0_i32 = arith.constant 0 : i32
    %c0_i32_0 = arith.constant 0 : i32
    return %arg0, %c0_i32, %arg1 : i32, i32, i32
  }
}

</mosaic_0001>

<bundles_post_ra>
// kernel: tpu_custom_call.1
= control target key start
LH: loop header
LB: loop body
LE: loop exit
PB: predicated region body
PF: predicated region fallthrough
CT: control target
= control target key end

     0   :  { %12 = vsyncpa [#allocation3], 0  ;;  %s1162_s0 = inlined_call_operand.vmem [shape: f32[2,4,256], index: 0, kind: input, shape index: {}]   ;;  %s1163_s1 = inlined_call_operand.vmem [shape: f32[32,4], index: 1, kind: input, shape index: {}]   ;;  %s1164_s2 = inlined_call_operand.vmem [shape: f32[32,1], index: 2, kind: input, shape index: {}]   ;;  %s1165_s3 = inlined_call_operand.vmem [shape: f32[32,32], index: 3, kind: input, shape index: {}]   ;;  %s1166_s4 = inlined_call_operand.vmem [shape: f32[32,1], index: 4, kind: input, shape index: {}]   ;;  %s1167_s5 = inlined_call_operand.vmem [shape: f32[8,32], index: 5, kind: input, shape index: {}]   ;;  %s1168_s6 = inlined_call_operand.vmem [shape: f32[8,1], index: 6, kind: input, shape index: {}]   ;;  %s1169_s7 = inlined_call_operand.hbm [shape: f32[2,8,256], index: 7, kind: output, shape index: {}]  }
   0x1   :  { %14 = vsyncpa [#allocation3 + $0x1], 0  ;;  %s991_s24 = smov 0   ;;  %s993_s25 = smov 0  }
   0x2   :  { %s995_s26 = smov 0   ;;  %s997_s27 = smov 0  }
   0x3   :  { %s999_s28 = smov 0   ;;  %s1001_s29 = smov 0  }
   0x4 LB: > { %s784_s30 = sadd.s32 4294967295, %s946_s29   ;;  %s785_s8 = sadd.s32 4294967294, %s946_s29   ;;  %s946_s29 = sphi %s1001_s29, %s20_s29   ;;  %s942_s28 = sphi %s999_s28, %s1176_s28   ;;  %s938_s27 = sphi %s997_s27, %s1175_s27   ;;  %s934_s26 = sphi %s995_s26, %s1174_s26   ;;  %s930_s25 = sphi %s993_s25, %s1173_s25   ;;  %s926_s24 = sphi %s991_s24, %s1172_s24  }
   0x5   : > { %s32_s9 = sadd.s32 1, %s942_s28  ;;  %s195_s10 = sadd.s32 1, %s934_s26 }
   0x6   : > { %p34_p0 = scmp.ge.s32.totalorder %s32_s9, 2  ;;  %p205_p1 = scmp.ne.s32.totalorder %s934_s26, %s930_s25 }
   0x7   : > { %p206_p2 = scmp.eq.s32.totalorder %s784_s30, 1  ;;  %p211_p3 = scmp.ne.s32.totalorder %s930_s25, %s926_s24 }
   0x8   : > { %s1178_s9 = smov (%p34_p0, %s32_s9), 0  ;;  %p212_p5 = scmp.eq.s32.totalorder %s785_s8, 1 }
   0x9   : > { %p1031_p4 = por %p206_p2, %p205_p1  ;;  %s190_s12 = ssub.s32 %s942_s28, %s1178_s9 }
   0xa   : > { %p788_p6 = scmp.ge.s32.totalorder %s946_s29, 1  ;;  %p193_p7 = scmp.eq.s32.totalorder %s190_s12, 0 }
   0xb   : > { %p1038_p8 = por %p212_p5, %p211_p3  ;;  %p261_p9 = scmp.lt.s32.totalorder %s946_s29, 3 }
   0xc   : > { %s1044_s14 = scalar_select %p193_p7, %s934_s26, %s195_s10  }
   0xd   : > { %p262_p10 = pnand %p788_p6, %p261_p9 }
   0xe   : > { %p298_p11 = scmp.lt.s32.totalorder (!%p262_p10), %s938_s27, 1  ;;  %s809_s19 = sshll.u32 (!%p262_p10), %s938_s27, 8 }
   0xf   : > { %265 = sbr.rel (%p262_p10) target bundleno = 682 (0x2aa), region = 48  ;;  %s706_s30 = scalar_lea.hbm (!%p262_p10), %s1169_s7, %s809_s19 }
  0x14   : > { %v948_v0 = vmov 0.0   ;;  %v316_v1 = vld [vmem:[%s1164_s2 + $0x18] sm:$0xff]  ;;  %s299_s17 = scalar_select %p298_p11, %s938_s27, 1  ;;  %v949_v2 = vmov 0   ;;  %v314_v3 = vld [vmem:[%s1164_s2 + $0x8] sm:$0xff]  ;;  %v315_v4 = vld [vmem:[%s1164_s2 + $0x10] sm:$0xff] }
  0x15   : > { %421 = vmatprep.mubr.f32.mxu0 %v948_v0  ;;  %567 = vmatprep.mubr.f32.mxu1 %v948_v0  ;;  %v313_v5 = vld [vmem:[%s1164_s2] sm:$0xff]  ;;  %vm352_vm0 = vcmask 1043456   ;;  %vm339_vm1 = vcmask 31744   ;;  %v469_v9 = vld [vmem:[%s1166_s4 + $0x18] sm:$0xff]  ;;  %v468_v10 = vld [vmem:[%s1166_s4 + $0x10] sm:$0xff]  ;;  %vm490_vm2 = vcmask 261120  }
  0x16   : > { %868 = vset.pattern.permute.xlu1 %v949_v2  ;;  %867 = vset.pattern.permute.xlu0 %v949_v2  ;;  %s808_s20 = sshll.u32 %s299_s17, 3  ;;  %v309_v8 = vld [vmem:[%s1163_s1] sm:$0xff]  ;;  %v310_v11 = vld [vmem:[%s1163_s1 + $0x8] sm:$0xff]  ;;  %v311_v14 = vld [vmem:[%s1163_s1 + $0x10] sm:$0xff]  ;;  %s294_s17 = sand.u32 1, %s930_s25  }
  0x17   : > { %334 = vperm.xlu0 %867, %v316_v1   ;;  %324 = vperm.xlu1 %868, %v314_v3   ;;  %s305_s12 = scalar_lea.vmem %s1162_s0, %s808_s20  ;;  %v467_v12 = vld [vmem:[%s1166_s4 + $0x8] sm:$0xff]  ;;  %v466_v13 = vld [vmem:[%s1166_s4] sm:$0xff]  ;;  %v312_v16 = vld [vmem:[%s1163_s1 + $0x18] sm:$0xff]  ;;  %s789_s18 = sshll.u32 %s294_s17, 4 }
  0x18   : > { %v308_v6 = vld [vmem:[%s305_s12] sm:$0xff]  ;;  %v463_v54 = vld [vmem:[%s1165_s3 + $0x8] sm:$0xff]  ;;  %v464_v55 = vld [vmem:[%s1165_s3 + $0x10] sm:$0xff]  ;;  %s296_s21 = scalar_lea.vmem [#allocation2], %s789_s18  ;;  %s692_s8 = scalar_lea.sflag [#allocation3], %s294_s17 }
  0x19   : > { %v338_v7 = vcombine.high %v308_v6, %v308_v6  ;;  %v609_v15 = vld [vmem:[%s1168_s6] sm:$0xff]  ;;  %v465_v56 = vld [vmem:[%s1165_s3 + $0x18] sm:$0xff]  ;;  %s708_s20 = sshll.u32 %s296_s21, 4  ;;  %s950_s12 = smov [#allocation2]   ;;  %s709_s20 = int_to_ptr.vmem [resolvable:$true] %s708_s20 }
  0x1a   : > { %v462_v53 = vld [vmem:[%s1165_s3] sm:$0xff]  ;;  %s870_s10 = scalar_lea.vmem %s709_s20, 256  ;;  %s874_s27 = sshll.u32 %s950_s12, 4  ;;  %s875_s27 = int_to_ptr.vmem [resolvable:$false] %s874_s27 }
  0x1b   : > { %329 = vperm.xlu0 %867, %v315_v4   ;;  %319 = vperm.xlu1 %868, %v313_v5   ;;  %p871_p12 = scmp.ne.s32.totalorder %s709_s20, %s870_s10  ;;  %s876_s15 = scalar_lea.vmem %s875_s27, 512 }
  0x1c   : > { %792 = vmatprep.subr.msk.mxu0 %vm352_vm0, %v338_v7  ;;  %p877_p1 = scmp.lt.s32.totalorder %s709_s20, %s875_s27  ;;  %p878_p2 = scmp.lt.s32.totalorder %s876_s15, %s870_s10 }
  0x1d   : > { %793 = vmatpush1.msk.msra.mxu0 %vm352_vm0, %v308_v6  ;;  %p872_p13 = pnand %p871_p12, %p1031_p4 }
  0x1e   : > { %794 = vmatmul.mubr.msk.f32.vlgmr.msra.gmra.mxu0 %vm339_vm1, %v309_v8  ;;  %p879_p3 = por %p878_p2, %p877_p1 }
  0x1f   : > { %487 = vperm.xlu0 %867, %v469_v9   ;;  %427 = vmatprep.mubr.f32.mxu0 %v948_v0  ;;  %p873_p0 = pneg %p872_p13 }
  0x20   : > { %482 = vperm.xlu1 %868, %v468_v10  }
  0x21   : > { %p880_p5 = pnand %p879_p3, %p873_p0 }
  0x22   : > { %795 = vmatmul.mubr.msk.f32.gmra.mxu0 %vm339_vm1, %v310_v11 }
  0x23   : > { %477 = vperm.xlu0 %867, %v467_v12   ;;  %433 = vmatprep.mubr.f32.mxu0 %v948_v0 }
  0x24   : > { %472 = vperm.xlu1 %868, %v466_v13  }
  0x26   : > { %796 = vmatmul.mubr.msk.f32.gmra.mxu0 %vm339_vm1, %v311_v14 }
  0x27   : > { %612 = vperm.xlu0 %867, %v609_v15   ;;  %439 = vmatprep.mubr.f32.mxu0 %v948_v0 }
  0x2a   : > { %797 = vmatmul.mubr.msk.f32.gmra.mxu0 %vm339_vm1, %v312_v16 }
  0x2b   : > { %682 = vmatprep.mubr.f32.mxu0 %v948_v0 }
  0x92   : > { %v335_v20 = vpop.permute.xlu0 %334  ;;  %v325_v23 = vpop.permute.xlu1 %324 }
  0x96   : > { %v330_v25 = vpop.permute.xlu0 %329  ;;  %v320_v31 = vpop.permute.xlu1 %319 }
  0x9a   : > { %v488_v61 = vpop.permute.xlu0 %487 }
  0x9b   : > { %v483_v63 = vpop.permute.xlu1 %482 }
  0x9e   : > { %v478_v5 = vpop.permute.xlu0 %477 }
  0x9f   : > { %v473_v9 = vpop.permute.xlu1 %472 }
  0xde   : > { %v423_v17 = vpop.f32.mrf.mxu0 }
  0xdf   : > { %v424_v39 = vadd.f32 %v423_v17, %v320_v31 }
  0xe0   : > { %v425_v18 = vpop.f32.mrf.mxu0 }
  0xe1   : > { %v426_v36 = vadd.f32 %v425_v18, %v320_v31  ;;  %v446_v47 = vmul.f32 0.01, %v424_v39 }
  0xe2   : > { %v429_v19 = vpop.f32.mrf.mxu0 }
  0xe3   : > { %v430_v34 = vadd.f32 %v429_v19, %v325_v23  ;;  %v447_v45 = vmul.f32 0.01, %v426_v36  ;;  %v454_v52 = vmax.f32 %v424_v39, %v446_v47 }
  0xe4   : > { %v431_v21 = vpop.f32.mrf.mxu0 }
  0xe5   : > { %v432_v32 = vadd.f32 %v431_v21, %v325_v23  ;;  %v448_v43 = vmul.f32 0.01, %v430_v34  ;;  %v455_v51 = vmax.f32 %v426_v36, %v447_v45 }
  0xe6   : > { %v435_v22 = vpop.f32.mrf.mxu0 }
  0xe7   : > { %v436_v29 = vadd.f32 %v435_v22, %v330_v25  ;;  %v449_v41 = vmul.f32 0.01, %v432_v32  ;;  %v456_v50 = vmax.f32 %v430_v34, %v448_v43 }
  0xe8   : > { %v437_v24 = vpop.f32.mrf.mxu0 }
  0xe9   : > { %v438_v27 = vadd.f32 %v437_v24, %v330_v25  ;;  %v450_v40 = vmul.f32 0.01, %v436_v29  ;;  %v457_v49 = vmax.f32 %v432_v32, %v449_v41 }
  0xea   : > { %v441_v26 = vpop.f32.mrf.mxu0 }
  0xeb   : > { %v442_v28 = vadd.f32 %v441_v26, %v335_v20  ;;  %v451_v37 = vmul.f32 0.01, %v438_v27  ;;  %v458_v48 = vmax.f32 %v436_v29, %v450_v40  ;;  %v608_v29 = vld [vmem:[%s1167_s5] sm:$0xff] }
  0xec   : > { %v443_v30 = vpop.f32.mrf.mxu0 }
  0xed   : > { %v444_v33 = vadd.f32 %v443_v30, %v335_v20  ;;  %v452_v35 = vmul.f32 0.01, %v442_v28  ;;  %v459_v46 = vmax.f32 %v438_v27, %v451_v37  ;;  %v613_v30 = vpop.permute.xlu0 %612 }
  0xef   : > { %v453_v38 = vmul.f32 0.01, %v444_v33  ;;  %v460_v44 = vmax.f32 %v442_v28, %v452_v35 }
  0xf1   : > { %v461_v42 = vmax.f32 %v444_v33, %v453_v38 }
  0xf3   : > { %527 = vmatprep.subr.mxu1 %v461_v42 }
  0xf4   : > { %528 = vmatpush1.msra.mxu1 %v460_v44 }
  0xf5   : > { %529 = vmatprep.subr.mxu1 %v459_v46 }
  0xf6   : > { %530 = vmatpush1.msra.mxu1 %v458_v48 }
  0xf7   : > { %531 = vmatprep.subr.mxu1 %v457_v49 }
  0xf8   : > { %532 = vmatpush1.msra.mxu1 %v456_v50 }
  0xf9   : > { %533 = vmatprep.subr.mxu1 %v455_v51 }
  0xfa   : > { %534 = vmatpush1.msra.mxu1 %v454_v52 }
  0xfb   : > { %798 = vmatmul.mubr.msk.f32.vlgmr.msra.gmra.mxu1 %vm490_vm2, %v462_v53 }
  0xfc   : > { %573 = vmatprep.mubr.f32.mxu1 %v948_v0 }
  0xff   : > { %799 = vmatmul.mubr.msk.f32.gmra.mxu1 %vm490_vm2, %v463_v54 }
 0x100   : > { %579 = vmatprep.mubr.f32.mxu1 %v948_v0 }
 0x103   : > { %800 = vmatmul.mubr.msk.f32.gmra.mxu1 %vm490_vm2, %v464_v55 }
 0x104   : > { %585 = vmatprep.mubr.f32.mxu1 %v948_v0 }
 0x107   : > { %801 = vmatmul.mubr.msk.f32.gmra.mxu1 %vm490_vm2, %v465_v56 }
 0x1bb   : > { %v569_v57 = vpop.f32.mrf.mxu1 }
 0x1bc   : > { %v570_v15 = vadd.f32 %v569_v57, %v473_v9 }
 0x1bd   : > { %v571_v58 = vpop.f32.mrf.mxu1 }
 0x1be   : > { %v572_v12 = vadd.f32 %v571_v58, %v473_v9  ;;  %v592_v23 = vmul.f32 0.01, %v570_v15 }
 0x1bf   : > { %v575_v59 = vpop.f32.mrf.mxu1 }
 0x1c0   : > { %v576_v10 = vadd.f32 %v575_v59, %v478_v5  ;;  %v593_v21 = vmul.f32 0.01, %v572_v12  ;;  %v600_v28 = vmax.f32 %v570_v15, %v592_v23 }
 0x1c1   : > { %v577_v60 = vpop.f32.mrf.mxu1 }
 0x1c2   : > { %v578_v7 = vadd.f32 %v577_v60, %v478_v5  ;;  %v594_v19 = vmul.f32 0.01, %v576_v10  ;;  %v601_v27 = vmax.f32 %v572_v12, %v593_v21 }
 0x1c3   : > { %v581_v62 = vpop.f32.mrf.mxu1 }
 0x1c4   : > { %v582_v6 = vadd.f32 %v581_v62, %v483_v63  ;;  %v595_v17 = vmul.f32 0.01, %v578_v7  ;;  %v602_v26 = vmax.f32 %v576_v10, %v594_v19 }
 0x1c5   : > { %v583_v1 = vpop.f32.mrf.mxu1 }
 0x1c6   : > { %v584_v3 = vadd.f32 %v583_v1, %v483_v63  ;;  %v596_v16 = vmul.f32 0.01, %v582_v6  ;;  %v603_v25 = vmax.f32 %v578_v7, %v595_v17 }
 0x1c7   : > { %v587_v2 = vpop.f32.mrf.mxu1 }
 0x1c8   : > { %v588_v4 = vadd.f32 %v587_v2, %v488_v61  ;;  %v597_v13 = vmul.f32 0.01, %v584_v3  ;;  %v604_v24 = vmax.f32 %v582_v6, %v596_v16 }
 0x1c9   : > { %v589_v0 = vpop.f32.mrf.mxu1 }
 0x1ca   : > { %v590_v8 = vadd.f32 %v589_v0, %v488_v61  ;;  %v598_v11 = vmul.f32 0.01, %v588_v4  ;;  %v605_v22 = vmax.f32 %v584_v3, %v597_v13 }
 0x1cc   : > { %v599_v14 = vmul.f32 0.01, %v590_v8  ;;  %v606_v20 = vmax.f32 %v588_v4, %v598_v11 }
 0x1ce   : > { %v607_v18 = vmax.f32 %v590_v8, %v599_v14 }
 0x1d0   : > { %642 = vmatprep.subr.mxu0 %v607_v18 }
 0x1d1   : > { %643 = vmatpush1.msra.mxu0 %v606_v20 }
 0x1d2   : > { %644 = vmatprep.subr.mxu0 %v605_v22 }
 0x1d3   : > { %645 = vmatpush1.msra.mxu0 %v604_v24 }
 0x1d4   : > { %646 = vmatprep.subr.mxu0 %v603_v25 }
 0x1d5   : > { %647 = vmatpush1.msra.mxu0 %v602_v26 }
 0x1d6   : > { %648 = vmatprep.subr.mxu0 %v601_v27 }
 0x1d7   : > { %649 = vmatpush1.msra.mxu0 %v600_v28 }
 0x1d8   : > { %802 = vmatmul.mubr.msk.f32.vlgmr.msra.gmra.mxu0 %vm490_vm2, %v608_v29 }
 0x298   : > { %v684_v31 = vpop.f32.mrf.mxu0 }
 0x299   : > { %v685_v32 = vadd.f32 %v684_v31, %v613_v30 }
 0x29a   : > { %v686_v33 = vpop.f32.mrf.mxu0 }
 0x29b   : > { %689 = vst [vmem:[%s296_s21] sm:$0xff] %v685_v32  ;;  %v687_v34 = vadd.f32 %v686_v33, %v613_v30 }
 0x29d   : > { %690 = vst [vmem:[%s296_s21 + $0x8] sm:$0xff] %v687_v34 }
 0x29e   : > { %883 = shalt.err (!%p880_p5)
}
 0x29f   : > { %s884_s16 = scalar_lea.hbm %s706_s30, 256  ;;  %s888_s19 = scalar_lea.hbm %s1169_s7, 512 }
 0x2a0   : > { %p885_p6 = scmp.ne.s32.totalorder %s706_s30, %s884_s16  ;;  %p889_p10 = scmp.lt.s32.totalorder %s706_s30, %s1169_s7 }
 0x2a1   : > { %p890_p11 = scmp.lt.s32.totalorder %s888_s19, %s884_s16 }
 0x2a2   : > { %p886_p7 = pnand %p885_p6, %p1031_p4 }
 0x2a3   : > { %p891_p12 = por %p890_p11, %p889_p10 }
 0x2a4   : > { %p887_p9 = pneg %p886_p7 }
 0x2a6   : > { %p892_p13 = pnand %p891_p12, %p887_p9 }
 0x2a8   : > { %895 = shalt.err (!%p892_p13)
}
 0x2a9   : > { %810 = dma.vmem_to_hbm [thread:$0]  (%p1031_p4), %s709_s20, 256, %s706_s30, %s692_s8  }
 0x2aa PF: > { %p816_p0 = scmp.ge.s32.totalorder %s946_s29, 2  ;;  %s720_s23 = sand.u32 1, %s926_s24  }
 0x2ab   : > { %s721_s10 = scalar_lea.sflag [#allocation3], %s720_s23 }
 0x2ac   : > { %p813_p1 = pnand %p816_p0, %p1038_p8 }
 0x2ae   : > { %p814_p2 = pneg %p813_p1 }
 0x2b0   : > { %921 = dma.done.wait (%p814_p2), %s721_s10, 256  }
 0x2b1   : > { %923 = vsyncadd (%p814_p2), %s721_s10, 4294967040  ;;  %s20_s29 = sadd.s32 1, %s946_s29   ;;  %s1172_s24 = smov %s930_s25 }
 0x2b2   : > { %p17_p3 = scmp.ge.s32.totalorder %s20_s29, 4   ;;  %s1173_s25 = smov %s934_s26 }
 0x2b3   : > { %s1174_s26 = smov %s1044_s14  ;;  %s1175_s27 = smov %s942_s28 }
 0x2b4   : > { %s1176_s28 = smov %s1178_s9  ;;  %19 = sbr.rel (!%p17_p3) target bundleno = 4 (0x4), region = 83 }
 0x2b9   :  { %726 = vsyncpa [#allocation3], 1 }
 0x2ba   :  { %728 = vsyncpa [#allocation3 + $0x1], 1 }

</bundles_post_ra>
